<compile_context>
chip_gen: v7x
topology: tpu7x:2x2x1
jax: 0.10.0
libtpu: 0.0.40
codegen_flags: <defaults>
</compile_context>

<pallas_src>
import functools
import math

import jax
import jax.numpy as jnp
from jax.experimental import pallas as pl
from jax.experimental.pallas import tpu as pltpu

LANE = 128  # TPU lane width — class dim padded to 128 so stores are lane-dense.


def _round_up(x, m):
    return ((x + m - 1) // m) * m


# ---------------------------------------------------------------------------
# Fused kernel
# ---------------------------------------------------------------------------

def _gcn_fused_kernel(sup1_ref, adj_ref, b1_ref, w2_ref, b2_ref,
                      o_ref, sup2_ref, *, with_relu):
    phase = pl.program_id(0)   # 0: build support2 row tiles, 1: layer 2 + log_softmax
    i = pl.program_id(1)       # node-row tile index
    tm = adj_ref.shape[0]      # static row-tile size

    # ---- phase 0: sup2_tile = relu(adj_tile @ support1 + b1) @ W2 (kept in VMEM) ----
    @pl.when(phase == 0)
    def _():
        h = jnp.dot(adj_ref[...], sup1_ref[...],
                    preferred_element_type=jnp.float32) + b1_ref[...]
        if with_relu:
            h = jnp.maximum(h, 0.0)
        # TODO(synk): F.dropout with training=True would need pltpu.prng_*; eval mode is identity.
        sup2 = jnp.dot(h.astype(w2_ref.dtype), w2_ref[...],
                       preferred_element_type=jnp.float32)
        row0 = pl.multiple_of(i * tm, tm)
        sup2_ref[pl.ds(row0, tm), :] = sup2.astype(sup2_ref.dtype)

    # ---- phase 1: out_tile = adj_tile @ support2 + b2, then row log_softmax ----
    @pl.when(phase == 1)
    def _():
        # Padded b2 lanes hold -1e30, so exp(pad - max) underflows to exactly 0:
        # no iota/where mask needed before the softmax.
        out = jnp.dot(adj_ref[...], sup2_ref[...],
                      preferred_element_type=jnp.float32) + b2_ref[...]
        m = jnp.max(out, axis=1, keepdims=True)
        shifted = out - m
        lse = jnp.log(jnp.sum(jnp.exp(shifted), axis=1, keepdims=True))
        o_ref[...] = (shifted - lse).astype(o_ref.dtype)


# ---------------------------------------------------------------------------
# VMEM / tile planning (per TPU generation)
# ---------------------------------------------------------------------------

def _vmem_plan():
    """Returns (compiler vmem limit, tile-planning budget) in bytes."""
    try:
        kind = jax.devices()[0].device_kind.lower()
    except Exception:
        kind = ""
    if "v7" in kind:                    # 64 MiB per TensorCore: leave headroom
        return 52 * 2**20, 40 * 2**20
    if "v5" in kind or "v6" in kind:    # 128 MiB physical
        return 112 * 2**20, 96 * 2**20
    return 64 * 2**20, 48 * 2**20       # unknown / older: conservative


def _plan_tiles(n, nhid, c_pad, budget):
    """Pick node-row tile tm and padded node count from the VMEM budget."""
    n16 = _round_up(max(n, 16), 16)
    # Resident bytes: support1 input (bf16, 2x-buffered), W2/b1/b2, sup2 scratch (bf16).
    fixed = 2 * n16 * nhid * 2
    fixed += 2 * (nhid * c_pad * 2 + (nhid + c_pad) * 4)
    fixed += n16 * c_pad * 2
    # Per row of a tile: adj slab (bf16, 2x-buffered) + output tile (f32, 2x-buffered).
    per_row = 2 * n16 * 2 + 2 * c_pad * 4
    tm_max = max(16, (budget - fixed) // per_row)
    tm_max = min(tm_max, n16)
    n_tiles = pl.cdiv(n16, tm_max)
    align = 128 if (n16 // n_tiles) >= 256 else 16   # 128-aligned rows when tiles are big
    tm = _round_up(pl.cdiv(n16, n_tiles), align)
    # TODO(synk): if the fixed scratch alone overflows VMEM (huge N), K-tile the adj
    # columns with an accumulation grid axis instead of whole (tm, N) slabs.
    return int(tm), int(tm * n_tiles)


# ---------------------------------------------------------------------------
# Wrapper
# ---------------------------------------------------------------------------

def gcn_forward(x, adj, params, *, with_relu=True):
    w1, b1, w2, b2 = params
    n = x.shape[0]
    nhid = w1.shape[1]
    nclass = w2.shape[1]

    f32, bf16 = jnp.float32, jnp.bfloat16
    c_pad = _round_up(max(nclass, LANE), LANE)
    vmem_limit, budget = _vmem_plan()
    tm, n_pad = _plan_tiles(n, nhid, c_pad, budget)
    n_tiles = n_pad // tm

    # support1 = x @ W1 is a tiny dense GEMM: let XLA do it, so x never needs to be
    # resident in kernel VMEM.  Streamed to the kernel in bf16.
    sup1 = jnp.zeros((n_pad, nhid), f32).at[:n, :].set(
        jnp.dot(x.astype(f32), w1.astype(f32), precision="highest")).astype(bf16)

    # adj streamed in bf16 (kernel is HBM-bound on this stream); f32 accumulation
    # happens inside the kernel via preferred_element_type.  Padded rows/cols are 0,
    # so padded nodes never affect real outputs.
    adj_p = jnp.zeros((n_pad, n_pad), f32).at[:n, :n].set(adj.astype(f32)).astype(bf16)

    b1_p = b1.reshape(1, nhid).astype(f32)
    w2_p = jnp.zeros((nhid, c_pad), f32).at[:, :nclass].set(w2.astype(f32)).astype(bf16)
    # Fold the class-padding mask into b2: padded lanes get -1e30.
    b2_p = jnp.full((1, c_pad), -1e30, f32).at[:, :nclass].set(
        b2.reshape(1, nclass).astype(f32))

    kernel = functools.partial(_gcn_fused_kernel, with_relu=with_relu)

    out_p = pl.pallas_call(
        kernel,
        out_shape=jax.ShapeDtypeStruct((n_pad, c_pad), f32),
        grid_spec=pltpu.PrefetchScalarGridSpec(
            num_scalar_prefetch=0,
            grid=(2, n_tiles),                                      # (phase, row tile)
            in_specs=[
                pl.BlockSpec((n_pad, nhid), lambda p, i: (0, 0)),   # support1 (bf16)
                pl.BlockSpec((tm, n_pad),   lambda p, i: (i, 0)),   # adj row slab (bf16)
                pl.BlockSpec((1, nhid),     lambda p, i: (0, 0)),   # b1 (f32)
                pl.BlockSpec((nhid, c_pad), lambda p, i: (0, 0)),   # W2 (bf16, lane-padded)
                pl.BlockSpec((1, c_pad),    lambda p, i: (0, 0)),   # b2 (f32, -1e30 padded)
            ],
            # Phase 0 never writes the output: all phase-0 iterations alias block
            # (0, 0) so it stays resident; every output block is written back to HBM
            # exactly once with real phase-1 data (no wasted zero-stores).
            out_specs=pl.BlockSpec((tm, c_pad), lambda p, i: (p * i, 0)),
            scratch_shapes=[
                pltpu.VMEM((n_pad, c_pad), bf16),   # support2 = relu(adj@sup1+b1) @ W2
            ],
        ),
        compiler_params=pltpu.CompilerParams(
            # Both axes are sequential: phase 1 reads the support2 scratch written by
            # every phase-0 row tile, so neither axis may be 'parallel'.
            dimension_semantics=("arbitrary", "arbitrary"),
            vmem_limit_bytes=vmem_limit,
        ),
    )(sup1, adj_p, b1_p, w2_p, b2_p)

    return out_p[:n, :nclass]


# ---------------------------------------------------------------------------
# Parameter init (matches GraphConvolution.reset_parameters: U(-stdv, stdv))
# ---------------------------------------------------------------------------

def init_gcn_params(key, nfeat, nhid, nclass):
    k1, k2, k3, k4 = jax.random.split(key, 4)
    stdv1 = 1.0 / math.sqrt(nhid)
    stdv2 = 1.0 / math.sqrt(nclass)
    w1 = jax.random.uniform(k1, (nfeat, nhid), jnp.float32, -stdv1, stdv1)
    b1 = jax.random.uniform(k2, (nhid,), jnp.float32, -stdv1, stdv1)
    w2 = jax.random.uniform(k3, (nhid, nclass), jnp.float32, -stdv2, stdv2)
    b2 = jax.random.uniform(k4, (nclass,), jnp.float32, -stdv2, stdv2)
    return (w1, b1, w2, b2)


# ---------------------------------------------------------------------------
# Main
# ---------------------------------------------------------------------------

if __name__ == "__main__":
    N, NFEAT, NHID, NCLASS = 64, 32, 32, 8

    key = jax.random.PRNGKey(0)
    kx, kadj, kp = jax.random.split(key, 3)

    # Node features
    x = jax.random.normal(kx, (N, NFEAT), jnp.float32)

    # Symmetric normalized dense adjacency: D^-1/2 (A + I) D^-1/2
    a = (jax.random.uniform(kadj, (N, N)) < 0.1).astype(jnp.float32)
    a = jnp.maximum(a, a.T)
    a = a + jnp.eye(N, dtype=jnp.float32)
    deg = jnp.sum(a, axis=1)
    d_inv_sqrt = 1.0 / jnp.sqrt(deg)
    adj = a * d_inv_sqrt[:, None] * d_inv_sqrt[None, :]

    params = init_gcn_params(kp, NFEAT, NHID, NCLASS)

    out = gcn_forward(x, adj, params, with_relu=True)
    jax.block_until_ready(out)
    assert out.shape == (N, NCLASS)

    w1, b1, w2, b2 = params
    f32, bf = jnp.float32, jnp.bfloat16

    # (a) Tight check vs. a reference that applies the same bf16 casts the kernel
    #     uses on its streamed operands (f32 accumulation throughout).
    adj_m = adj.astype(bf).astype(f32)
    sup1_m = jnp.dot(x, w1, precision="highest").astype(bf).astype(f32)
    h_m = jnp.maximum(adj_m @ sup1_m + b1, 0.0)
    w2_m = w2.astype(bf).astype(f32)
    sup2_m = (h_m.astype(bf).astype(f32) @ w2_m).astype(bf).astype(f32)
    ref_match = jax.nn.log_softmax(adj_m @ sup2_m + b2, axis=1)
    assert bool(jnp.max(jnp.abs(out - ref_match)) < 1e-3)

    # (b) Looser check vs. the pure-f32 module semantics (adj streamed in bf16).
    h_f = jnp.maximum(
        jnp.dot(adj, jnp.dot(x, w1, precision="highest"), precision="highest") + b1, 0.0)
    ref_f32 = jax.nn.log_softmax(
        jnp.dot(adj, jnp.dot(h_f, w2, precision="highest"), precision="highest") + b2,
        axis=1)
    assert bool(jnp.max(jnp.abs(out - ref_f32)) < 1e-1)

    # (c) Rows are valid log-probabilities.
    row_sums = jnp.sum(jnp.exp(out), axis=1)
    assert bool(jnp.all(jnp.abs(row_sums - 1.0) < 1e-3))

    print("KERNEL_OK")
</pallas_src>

<mosaic_0001>
module attributes {stable_mosaic.version = 11 : i64} {
  func.func @_gcn_fused_kernel(%arg0: i32, %arg1: i32, %arg2: memref<64x32xbf16, #tpu.memory_space<vmem>>, %arg3: memref<64x64xbf16, #tpu.memory_space<vmem>>, %arg4: memref<1x32xf32, #tpu.memory_space<vmem>>, %arg5: memref<32x128xbf16, #tpu.memory_space<vmem>>, %arg6: memref<1x128xf32, #tpu.memory_space<vmem>>, %arg7: memref<64x128xf32, #tpu.memory_space<vmem>>, %arg8: memref<64x128xbf16, #tpu.memory_space<vmem>>) attributes {dimension_semantics = [#tpu.dimension_semantics<arbitrary>, #tpu.dimension_semantics<arbitrary>], iteration_bounds = array<i64: 2, 1>, scalar_prefetch = 0 : i64, scratch_operands = 1 : i64, tpu.core_type = #tpu.core_type<tc>, window_params = [{pipeline_mode = #tpu.pipeline_mode<synchronous>, transform_indices = @transform_0, window_bounds = array<i64: 64, 32>}, {transform_indices = @transform_1, window_bounds = array<i64: 64, 64>}, {pipeline_mode = #tpu.pipeline_mode<synchronous>, transform_indices = @transform_2, window_bounds = array<i64: 1, 32>}, {pipeline_mode = #tpu.pipeline_mode<synchronous>, transform_indices = @transform_3, window_bounds = array<i64: 32, 128>}, {pipeline_mode = #tpu.pipeline_mode<synchronous>, transform_indices = @transform_4, window_bounds = array<i64: 1, 128>}, {transform_indices = @transform_5, window_bounds = array<i64: 64, 128>}]} {
    %c0_i32 = arith.constant 0 : i32
    %0 = arith.cmpi eq, %arg0, %c0_i32 : i32
    %1 = arith.extui %0 : i1 to i32
    %c0_i32_0 = arith.constant 0 : i32
    %2 = arith.cmpi ne, %1, %c0_i32_0 : i32
    scf.if %2 {
      %c0 = arith.constant 0 : index
      %c0_2 = arith.constant 0 : index
      %6 = vector.load %arg3[%c0, %c0_2] : memref<64x64xbf16, #tpu.memory_space<vmem>>, vector<64x64xbf16>
      %c0_3 = arith.constant 0 : index
      %c0_4 = arith.constant 0 : index
      %7 = vector.load %arg2[%c0_3, %c0_4] : memref<64x32xbf16, #tpu.memory_space<vmem>>, vector<64x32xbf16>
      %cst = arith.constant dense<0.000000e+00> : vector<64x32xf32>
      %8 = tpu.matmul %6, %7, %cst {dimension_numbers = #tpu.dot_dimension_numbers<[1], [0], [0], [1], [0, 0, 1, 1], [], []>} : vector<64x64xbf16>, vector<64x32xbf16>, vector<64x32xf32> -> vector<64x32xf32>
      %c0_5 = arith.constant 0 : index
      %c0_6 = arith.constant 0 : index
      %9 = vector.load %arg4[%c0_5, %c0_6] : memref<1x32xf32, #tpu.memory_space<vmem>>, vector<1x32xf32>
      %10 = vector.broadcast %9 : vector<1x32xf32> to vector<64x32xf32>
      %11 = arith.addf %8, %10 : vector<64x32xf32>
      %cst_7 = arith.constant 0.000000e+00 : f32
      %12 = vector.broadcast %cst_7 : f32 to vector<64x32xf32>
      %13 = arith.maximumf %11, %12 : vector<64x32xf32>
      %14 = arith.truncf %13 : vector<64x32xf32> to vector<64x32xbf16>
      %c0_8 = arith.constant 0 : index
      %c0_9 = arith.constant 0 : index
      %15 = vector.load %arg5[%c0_8, %c0_9] : memref<32x128xbf16, #tpu.memory_space<vmem>>, vector<32x128xbf16>
      %cst_10 = arith.constant dense<0.000000e+00> : vector<64x128xf32>
      %16 = tpu.matmul %14, %15, %cst_10 {dimension_numbers = #tpu.dot_dimension_numbers<[1], [0], [0], [1], [0, 0, 1, 1], [], []>} : vector<64x32xbf16>, vector<32x128xbf16>, vector<64x128xf32> -> vector<64x128xf32>
      %c64_i32 = arith.constant 64 : i32
      %17 = arith.muli %arg1, %c64_i32 : i32
      %18 = tpu.assume_multiple %17, 64 : i32
      %19 = arith.truncf %16 : vector<64x128xf32> to vector<64x128xbf16>
      %20 = arith.index_cast %18 : i32 to index
      %c0_11 = arith.constant 0 : index
      %21 = vector.load %arg8[%20, %c0_11] : memref<64x128xbf16, #tpu.memory_space<vmem>>, vector<64x128xbf16>
      tpu.vector_store %arg8[%20, %c0_11], %19 {strides = array<i32>} : memref<64x128xbf16, #tpu.memory_space<vmem>>, vector<64x128xbf16>,
    } else {
    }
    %c1_i32 = arith.constant 1 : i32
    %3 = arith.cmpi eq, %arg0, %c1_i32 : i32
    %4 = arith.extui %3 : i1 to i32
    %c0_i32_1 = arith.constant 0 : i32
    %5 = arith.cmpi ne, %4, %c0_i32_1 : i32
    scf.if %5 {
      %c0 = arith.constant 0 : index
      %c0_2 = arith.constant 0 : index
      %6 = vector.load %arg3[%c0, %c0_2] : memref<64x64xbf16, #tpu.memory_space<vmem>>, vector<64x64xbf16>
      %c0_3 = arith.constant 0 : index
      %c0_4 = arith.constant 0 : index
      %7 = vector.load %arg8[%c0_3, %c0_4] : memref<64x128xbf16, #tpu.memory_space<vmem>>, vector<64x128xbf16>
      %cst = arith.constant dense<0.000000e+00> : vector<64x128xf32>
      %8 = tpu.matmul %6, %7, %cst {dimension_numbers = #tpu.dot_dimension_numbers<[1], [0], [0], [1], [0, 0, 1, 1], [], []>} : vector<64x64xbf16>, vector<64x128xbf16>, vector<64x128xf32> -> vector<64x128xf32>
      %c0_5 = arith.constant 0 : index
      %c0_6 = arith.constant 0 : index
      %9 = vector.load %arg6[%c0_5, %c0_6] : memref<1x128xf32, #tpu.memory_space<vmem>>, vector<1x128xf32>
      %10 = vector.broadcast %9 : vector<1x128xf32> to vector<64x128xf32>
      %11 = arith.addf %8, %10 : vector<64x128xf32>
      %cst_7 = arith.constant dense<0xFF800000> : vector<64xf32>
      %12 = vector.multi_reduction <maximumf>, %11, %cst_7 [1] : vector<64x128xf32> to vector<64xf32>
      %13 = vector.shape_cast %12 : vector<64xf32> to vector<64x1xf32>
      %14 = vector.broadcast %13 : vector<64x1xf32> to vector<64x128xf32>
      %15 = arith.subf %11, %14 : vector<64x128xf32>
      %16 = math.exp %15 : vector<64x128xf32>
      %cst_8 = arith.constant dense<0.000000e+00> : vector<64xf32>
      %17 = vector.multi_reduction <add>, %16, %cst_8 [1] : vector<64x128xf32> to vector<64xf32>
      %18 = vector.shape_cast %17 : vector<64xf32> to vector<64x1xf32>
      %19 = math.log %18 : vector<64x1xf32>
      %20 = vector.broadcast %19 : vector<64x1xf32> to vector<64x128xf32>
      %21 = arith.subf %15, %20 : vector<64x128xf32>
      %c0_9 = arith.constant 0 : index
      %c0_10 = arith.constant 0 : index
      %22 = vector.load %arg7[%c0_9, %c0_10] : memref<64x128xf32, #tpu.memory_space<vmem>>, vector<64x128xf32>
      tpu.vector_store %arg7[%c0_9, %c0_10], %21 {strides = array<i32>} : memref<64x128xf32, #tpu.memory_space<vmem>>, vector<64x128xf32>,
    } else {
    }
    return
  }
  func.func @transform_0(%arg0: i32, %arg1: i32) -> (i32, i32) {
    %c0_i32 = arith.constant 0 : i32
    %c0_i32_0 = arith.constant 0 : i32
    %c0_i32_1 = arith.constant 0 : i32
    return %c0_i32, %c0_i32_0 : i32, i32
  }
  func.func @transform_1(%arg0: i32, %arg1: i32) -> (i32, i32) {
    %c0_i32 = arith.constant 0 : i32
    %c0_i32_0 = arith.constant 0 : i32
    return %arg1, %c0_i32 : i32, i32
  }
  func.func @transform_2(%arg0: i32, %arg1: i32) -> (i32, i32) {
    %c0_i32 = arith.constant 0 : i32
    %c0_i32_0 = arith.constant 0 : i32
    %c0_i32_1 = arith.constant 0 : i32
    return %c0_i32, %c0_i32_0 : i32, i32
  }
  func.func @transform_3(%arg0: i32, %arg1: i32) -> (i32, i32) {
    %c0_i32 = arith.constant 0 : i32
    %c0_i32_0 = arith.constant 0 : i32
    %c0_i32_1 = arith.constant 0 : i32
    return %c0_i32, %c0_i32_0 : i32, i32
  }
  func.func @transform_4(%arg0: i32, %arg1: i32) -> (i32, i32) {
    %c0_i32 = arith.constant 0 : i32
    %c0_i32_0 = arith.constant 0 : i32
    %c0_i32_1 = arith.constant 0 : i32
    return %c0_i32, %c0_i32_0 : i32, i32
  }
  func.func @transform_5(%arg0: i32, %arg1: i32) -> (i32, i32) {
    %0 = arith.muli %arg0, %arg1 : i32
    %c0_i32 = arith.constant 0 : i32
    %c0_i32_0 = arith.constant 0 : i32
    return %0, %c0_i32 : i32, i32
  }
}

</mosaic_0001>

<bundles_post_ra>
// kernel: tpu_custom_call.1
= control target key start
LH: loop header
LB: loop body
LE: loop exit
PB: predicated region body
PF: predicated region fallthrough
CT: control target
= control target key end

     0   :  { %10 = vsyncpa [#allocation4], 0  ;;  %s1651_s0 = inlined_call_operand.hbm [shape: bf16[64,32], index: 0, kind: input, shape index: {}]   ;;  %s1652_s1 = inlined_call_operand.hbm [shape: bf16[64,64], index: 1, kind: input, shape index: {}]   ;;  %s1653_s2 = inlined_call_operand.hbm [shape: f32[1,32], index: 2, kind: input, shape index: {}]   ;;  %s1654_s3 = inlined_call_operand.hbm [shape: bf16[32,128], index: 3, kind: input, shape index: {}]   ;;  %s1655_s4 = inlined_call_operand.hbm [shape: f32[1,128], index: 4, kind: input, shape index: {}]   ;;  %s1656_s5 = inlined_call_operand.hbm [shape: f32[64,128], index: 5, kind: output, shape index: {}]  }
   0x1   :  { %11 = vsyncpa [#allocation7], 0 }
   0x2   :  { %12 = vsyncpa [#allocation10], 0 }
   0x3   :  { %13 = vsyncpa [#allocation5], 0 }
   0x4   :  { %15 = vsyncpa [#allocation5 + $0x1], 0  ;;  %s1407_s18 = smov 0   ;;  %s1409_s19 = smov 0  }
   0x5   :  { %s1411_s20 = smov 0  }
   0x6 LB: > { %s902_s21 = sadd.s32 4294967295, %s1365_s20   ;;  %s903_s22 = sadd.s32 4294967294, %s1365_s20   ;;  %s1365_s20 = sphi %s1411_s20, %s21_s20   ;;  %s1361_s19 = sphi %s1409_s19, %s1668_s19   ;;  %s1357_s18 = sphi %s1407_s18, %s1667_s18  }
   0x7   : > { %p904_p0 = scmp.ge.s32.totalorder %s1365_s20, 1  ;;  %p176_p1 = scmp.lt.s32.totalorder %s1365_s20, 3 }
   0x8   : > { %p1428_p2 = scmp.eq.s32.totalorder %s902_s21, 0  ;;  %s1367_s25 = smov [#allocation6]  }
   0x9   : > { %p1432_p3 = pnand %p904_p0, %p176_p1  ;;  %s204_s26 = sshll.u32 %s1367_s25, 4  ;;  %s205_s26 = int_to_ptr.vmem [resolvable:$true] %s204_s26 }
   0xa   : > { %s1660_s23 = scalar_select %p1428_p2, 1, 0 }
   0xb   : > { %s1661_s24 = scalar_select %p1432_p3, 1, 0 }
   0xc   : > { %p1048_p4 = pneg %p1432_p3  ;;  %s1368_s27 = smov [#allocation9]  }
   0xd   : > { %s228_s28 = sshll.u32 %s1368_s27, 4  ;;  %s1161_s7 = scalar_lea.hbm %s1652_s1, 512  ;;  %s1444_s28 = int_to_ptr.vmem [resolvable:$true] %s228_s28 }
   0xe   : > { %p1440_p5 = pnand %p1428_p2, %p1048_p4  ;;  %p1162_p6 = scmp.ne.s32.totalorder %s1652_s1, %s1161_s7 }
   0xf   : > { %p1168_p10 = scmp.lt.u32.totalorder %s1161_s7, %s1652_s1 }
  0x10   : > { %p1454_p7 = pneg %p1440_p5 }
  0x12   : > { %p1164_p8 = pnand %p1454_p7, %p1162_p6 }
  0x14   : > { %p1165_p9 = pneg %p1164_p8 }
  0x16   : > { %p1170_p11 = pnand %p1168_p10, %p1165_p9 }
  0x18   : > { %1173 = shalt.err (!%p1170_p11)
}
  0x19   : > { %s1174_s13 = scalar_lea.vmem %s205_s26, 512  ;;  %p1182_p1 = scmp.lt.s32.totalorder %s205_s26, %s205_s26 }
  0x1a   : > { %p1175_p12 = scmp.ne.s32.totalorder %s205_s26, %s1174_s13  ;;  %p1183_p4 = scmp.lt.s32.totalorder %s1174_s13, %s1174_s13 }
  0x1c   : > { %p1177_p13 = pnand %p1175_p12, %p1454_p7  ;;  %p1184_p2 = por %p1183_p4, %p1182_p1 }
  0x1e   : > { %p1178_p0 = pneg %p1177_p13 }
  0x20   : > { %p1185_p3 = pnand %p1184_p2, %p1178_p0 }
  0x22   : > { %1188 = shalt.err (!%p1185_p3)
}
  0x23   : > { %s1369_s14 = smov 64   ;;  %s1370_s15 = smov 4  }
  0x24   : > { %1054 = dma.hbm_to_vmem [thread:$0]  (!%p1440_p5), %s1652_s1, 512, %s205_s26, [#allocation7], %s1369_s14, %s1369_s14, %s1370_s15  }
  0x25   : > { %s1189_s30 = scalar_lea.hbm %s1654_s3, 256 }
  0x26   : > { %p1190_p2 = scmp.ne.s32.totalorder %s1654_s3, %s1189_s30  ;;  %p1196_p8 = scmp.lt.u32.totalorder %s1189_s30, %s1654_s3 }
  0x28   : > { %p1192_p3 = pnand %p1190_p2, %p1454_p7 }
  0x2a   : > { %p1193_p6 = pneg %p1192_p3 }
  0x2c   : > { %p1198_p9 = pnand %p1196_p8, %p1193_p6 }
  0x2e   : > { %1201 = shalt.err (!%p1198_p9)
}
  0x2f   : > { %s1202_s26 = scalar_lea.vmem %s1444_s28, 256  ;;  %p1210_p13 = scmp.lt.s32.totalorder %s1444_s28, %s1444_s28 }
  0x30   : > { %p1203_p10 = scmp.ne.s32.totalorder %s1444_s28, %s1202_s26  ;;  %p1211_p0 = scmp.lt.s32.totalorder %s1202_s26, %s1202_s26 }
  0x32   : > { %p1205_p11 = pnand %p1203_p10, %p1454_p7  ;;  %p1212_p1 = por %p1211_p0, %p1210_p13 }
  0x34   : > { %p1206_p12 = pneg %p1205_p11 }
  0x36   : > { %p1213_p4 = pnand %p1212_p1, %p1206_p12 }
  0x38   : > { %1216 = shalt.err (!%p1213_p4)
}
  0x39   : > { %1060 = dma.hbm_to_vmem [thread:$0]  (!%p1440_p5), %s1654_s3, 256, %s1444_s28, [#allocation10], %s1369_s14, %s1369_s14, %s1370_s15  }
  0x3a   : > { %s33_s13 = sadd.s32 1, %s1361_s19  ;;  %s1371_s16 = smov [#allocation3]  }
  0x3b   : > { %p35_p2 = scmp.ge.s32.totalorder %s33_s13, 2  ;;  %s188_s17 = sshll.u32 %s1371_s16, 4  ;;  %s189_s17 = int_to_ptr.vmem [resolvable:$true] %s188_s17 }
  0x3c   : > { %s1217_s30 = scalar_lea.hbm %s1651_s0, 512 }
  0x3d   : > { %s1670_s13 = smov (%p35_p2, %s33_s13), 0  ;;  %p1218_p3 = scmp.ne.s32.totalorder %s1651_s0, %s1217_s30 }
  0x3e   : > { %p1224_p9 = scmp.lt.u32.totalorder %s1217_s30, %s1651_s0 }
  0x3f   : > { %p1220_p6 = pnand %p1218_p3, %p1454_p7 }
  0x41   : > { %p1221_p8 = pneg %p1220_p6 }
  0x43   : > { %p1226_p10 = pnand %p1224_p9, %p1221_p8 }
  0x45   : > { %1229 = shalt.err (!%p1226_p10)
}
  0x46   : > { %s1230_s9 = scalar_lea.vmem %s189_s17, 512  ;;  %p1238_p0 = scmp.lt.s32.totalorder %s189_s17, %s189_s17 }
  0x47   : > { %p1231_p11 = scmp.ne.s32.totalorder %s189_s17, %s1230_s9  ;;  %p1239_p1 = scmp.lt.s32.totalorder %s1230_s9, %s1230_s9 }
  0x49   : > { %p1233_p12 = pnand %p1231_p11, %p1454_p7  ;;  %p1240_p4 = por %p1239_p1, %p1238_p0 }
  0x4b   : > { %p1234_p13 = pneg %p1233_p12 }
  0x4d   : > { %p1241_p2 = pnand %p1240_p4, %p1234_p13 }
  0x4f   : > { %1244 = shalt.err (!%p1241_p2)
}
  0x50   : > { %1051 = dma.hbm_to_vmem [thread:$0]  (!%p1440_p5), %s1651_s0, 512, %s189_s17, [#allocation4], %s1369_s14, %s1369_s14, %s1370_s15  }
  0x51   : > { %s1372_s12 = smov [#allocation8]   ;;  %s1373_s25 = smov [#allocation11]  }
  0x52   : > { %s218_s16 = sshll.u32 %s1372_s12, 4  ;;  %s242_s27 = sshll.u32 %s1373_s25, 4  ;;  %s219_s16 = int_to_ptr.vmem [resolvable:$true] %s218_s16  ;;  %s243_s27 = int_to_ptr.vmem [resolvable:$true] %s242_s27 }
  0x53   : > { %s1245_s7 = scalar_lea.hbm %s1653_s2, 16 }
  0x54   : > { %p1246_p3 = scmp.ne.s32.totalorder %s1653_s2, %s1245_s7  ;;  %p1252_p9 = scmp.lt.u32.totalorder %s1245_s7, %s1653_s2 }
  0x56   : > { %p1248_p6 = pnand %p1246_p3, %p1454_p7 }
  0x58   : > { %p1249_p8 = pneg %p1248_p6 }
  0x5a   : > { %p1254_p10 = pnand %p1252_p9, %p1249_p8 }
  0x5c   : > { %1257 = shalt.err (!%p1254_p10)
}
  0x5d   : > { %s1258_s14 = scalar_lea.vmem %s219_s16, 16  ;;  %s1265_s15 = scalar_lea.vmem %s219_s16, 32 }
  0x5e   : > { %p1259_p11 = scmp.ne.s32.totalorder %s219_s16, %s1258_s14  ;;  %p1266_p0 = scmp.lt.s32.totalorder %s219_s16, %s219_s16 }
  0x5f   : > { %p1267_p1 = scmp.lt.s32.totalorder %s1265_s15, %s1258_s14 }
  0x60   : > { %p1261_p12 = pnand %p1259_p11, %p1454_p7 }
  0x61   : > { %p1268_p4 = por %p1267_p1, %p1266_p0 }
  0x62   : > { %p1262_p13 = pneg %p1261_p12 }
  0x64   : > { %p1269_p2 = pnand %p1268_p4, %p1262_p13 }
  0x66   : > { %1272 = shalt.err (!%p1269_p2)
}
  0x67   : > { %1057 = dma.hbm_to_vmem [thread:$0]  (!%p1440_p5), %s1653_s2, 16, %s219_s16, [#allocation7]  }
  0x68   : > { %s1273_s30 = scalar_lea.hbm %s1655_s4, 16 }
  0x69   : > { %p1274_p3 = scmp.ne.s32.totalorder %s1655_s4, %s1273_s30  ;;  %p1280_p9 = scmp.lt.u32.totalorder %s1273_s30, %s1655_s4 }
  0x6b   : > { %p1276_p6 = pnand %p1274_p3, %p1454_p7 }
  0x6d   : > { %p1277_p8 = pneg %p1276_p6 }
  0x6f   : > { %p1282_p10 = pnand %p1280_p9, %p1277_p8 }
  0x71   : > { %1285 = shalt.err (!%p1282_p10)
}
  0x72   : > { %s1286_s9 = scalar_lea.vmem %s243_s27, 16  ;;  %s1293_s16 = scalar_lea.vmem %s243_s27, 32 }
  0x73   : > { %p1287_p11 = scmp.ne.s32.totalorder %s243_s27, %s1286_s9  ;;  %p1294_p0 = scmp.lt.s32.totalorder %s243_s27, %s243_s27 }
  0x74   : > { %p1295_p1 = scmp.lt.s32.totalorder %s1293_s16, %s1286_s9 }
  0x75   : > { %p1289_p12 = pnand %p1287_p11, %p1454_p7 }
  0x76   : > { %p1296_p4 = por %p1295_p1, %p1294_p0 }
  0x77   : > { %p1290_p13 = pneg %p1289_p12 }
  0x79   : > { %p1297_p2 = pnand %p1296_p4, %p1290_p13 }
  0x7b   : > { %1300 = shalt.err (!%p1297_p2)
}
  0x7c   : > { %1063 = dma.hbm_to_vmem [thread:$0]  (!%p1440_p5), %s1655_s4, 16, %s243_s27, [#allocation10]  }
  0x7d   : > { %p1664_p3 = scmp.ne.s32.totalorder %s1661_s24, 0 }
  0x7e   : > { %p1665_p6 = scmp.ne.s32.totalorder (!%p1664_p3), %s1660_s23, 0 }
  0x7f   : > { %255 = sbr.rel (%p1664_p3) target bundleno = 1193 (0x4a9), region = 40 }
  0x86   : > { %1340 = dma.done.wait (%p1665_p6), [#allocation4], 512  }
  0x87   : > { %1342 = vsyncadd (%p1665_p6), [#allocation4], 4294966784 }
  0x88   : > { %1344 = dma.done.wait (%p1665_p6), [#allocation7], 528  }
  0x89   : > { %1346 = vsyncadd (%p1665_p6), [#allocation7], 4294966768 }
  0x8a   : > { %1348 = dma.done.wait (%p1665_p6), [#allocation10], 272  }
  0x8b   : > { %1350 = vsyncadd (%p1665_p6), [#allocation10], 4294967024  ;;  %p916_p5 = scmp.ne.s32.totalorder %s1357_s18, 0 }
  0x8c   : > { %v1115_v0 = vld [vmem:[#allocation3] sm:$0xff] (!%p916_p5)   ;;  %v1116_v1 = vld [vmem:[#allocation3 + $0x8] sm:$0xff] (!%p916_p5)   ;;  %v1117_v2 = vld [vmem:[#allocation3 + $0x10] sm:$0xff] (!%p916_p5)   ;;  %vm369_vm0 = vcmask (!%p916_p5), 523264   ;;  %vm475_vm1 = vcmask (!%p916_p5), 261120  }
  0x8d   : > { %301 = sbr.rel (%p916_p5) target bundleno = 605 (0x25d), region = 64  ;;  %972 = vmatprep.subr.bf16.mxu0 (!%p916_p5), %v1115_v0  ;;  %v1119_v3 = vld [vmem:[#allocation6] sm:$0xff] (!%p916_p5)   ;;  %v1118_v4 = vld [vmem:[#allocation3 + $0x18] sm:$0xff] (!%p916_p5)   ;;  %v1120_v5 = vld [vmem:[#allocation6 + $0x8] sm:$0xff] (!%p916_p5)  }
  0x8e   : > { %973 = vmatpush3.bf16.msra.mxu0 (!%p916_p5), %v1115_v0  ;;  %980 = vmatprep.mubr.msk.bf16.mxu0 (!%p916_p5), %vm369_vm0, %v1119_v3  ;;  %v1121_v6 = vld [vmem:[#allocation6 + $0x10] sm:$0xff] (!%p916_p5)   ;;  %v1122_v7 = vld [vmem:[#allocation6 + $0x18] sm:$0xff] (!%p916_p5)   ;;  %v1123_v8 = vld [vmem:[#allocation9] sm:$0xff] (!%p916_p5)  }
  0x8f   : > { %974 = vmatprep.subr.bf16.mxu0 (!%p916_p5), %v1116_v1  ;;  %988 = vmatprep.subr.bf16.mxu1 (!%p916_p5), %v1123_v8  ;;  %v1124_v9 = vld [vmem:[#allocation9 + $0x8] sm:$0xff] (!%p916_p5)   ;;  %v917_v10 = vld [vmem:[#allocation8] ss:$0 sm:$0xff] (!%p916_p5) }
  0x90   : > { %989 = vmatpush3.bf16.msra.mxu1 (!%p916_p5), %v1123_v8 }
  0x91   : > { %990 = vmatprep.subr.bf16.mxu1 (!%p916_p5), %v1124_v9 }
  0x92   : > { %975 = vmatpush3.bf16.msra.mxu0 (!%p916_p5), %v1116_v1 }
  0x93   : > { %976 = vmatprep.subr.bf16.mxu0 (!%p916_p5), %v1117_v2 }
  0x94   : > { %991 = vmatpush3.bf16.msra.mxu1 %v1124_v9 }
  0x96   : > { %977 = vmatpush3.bf16.msra.mxu0 %v1117_v2 }
  0x97   : > { %978 = vmatprep.subr.bf16.mxu0 %v1118_v4 }
  0x9a   : > { %979 = vmatpush3.bf16.msra.mxu0 %v1118_v4 }
  0x9d   : > { %981 = vmatmul.mubr.msk.bf16.vlgmr.msra.gmra.mrb[0].mxu0 %vm369_vm0, %v1120_v5 }
  0x9e   : > { %984 = vmatprep.mubr.msk.bf16.mxu0 %vm369_vm0, %v1121_v6 }
  0xa5   : > { %985 = vmatmul.mubr.msk.bf16.gmra.mrb[4].mxu0 %vm369_vm0, %v1122_v7 }
 0x170   : > { %v982_v11 = vpop.f32.mrb[0].mxu0 }
 0x171   : > { %v425_v12 = vadd.f32 %v982_v11, %v917_v10  ;;  %v416_v13 = vpop.f32.mrb[1].mxu0 }
 0x172   : > { %v417_v14 = vadd.f32 %v917_v10, %v416_v13  ;;  %v983_v15 = vpop.f32.mrb[2].mxu0 }
 0x173   : > { %v428_v16 = vadd.f32 %v983_v15, %v917_v10  ;;  %v419_v17 = vpop.f32.mrb[3].mxu0  ;;  %v449_v19 = vmax.f32 %v425_v12, 0.0 }
 0x174   : > { %v420_v18 = vadd.f32 %v917_v10, %v419_v17  ;;  %v447_v21 = vmax.f32 %v417_v14, 0.0 }
 0x175   : > { %v450_v20 = vmax.f32 %v428_v16, 0.0 }
 0x176   : > { %v448_v22 = vmax.f32 %v420_v18, 0.0 }
 0x177   : > { %v456_v23 = vpack.c.bf16 %v450_v20, %v449_v19 }
 0x178   : > { %v986_v24 = vpop.f32.mrb[4].mxu0  ;;  %v455_v25 = vpack.c.bf16 %v448_v22, %v447_v21 }
 0x179   : > { %v441_v26 = vadd.f32 %v986_v24, %v917_v10  ;;  %v432_v27 = vpop.f32.mrb[5].mxu0 }
 0x17a   : > { %v433_v28 = vadd.f32 %v917_v10, %v432_v27  ;;  %v987_v29 = vpop.f32.mrb[6].mxu0  ;;  %992 = vmatprep.mubr.msk.bf16.mxu1 %vm475_vm1, %v455_v25 }
 0x17b   : > { %v444_v30 = vadd.f32 %v987_v29, %v917_v10  ;;  %v435_v31 = vpop.f32.mrb[7].mxu0  ;;  %993 = vmatmul.mubr.msk.bf16.vlgmr.msra.gmra.mrb[0].mxu1 %vm475_vm1, %v456_v23  ;;  %v453_v33 = vmax.f32 %v441_v26, 0.0 }
 0x17c   : > { %v436_v32 = vadd.f32 %v917_v10, %v435_v31  ;;  %v451_v35 = vmax.f32 %v433_v28, 0.0 }
 0x17d   : > { %v454_v34 = vmax.f32 %v444_v30, 0.0 }
 0x17e   : > { %v452_v36 = vmax.f32 %v436_v32, 0.0 }
 0x17f   : > { %v458_v37 = vpack.c.bf16 %v454_v34, %v453_v33 }
 0x180   : > { %v457_v38 = vpack.c.bf16 %v452_v36, %v451_v35 }
 0x182   : > { %996 = vmatprep.mubr.msk.bf16.mxu1 %vm475_vm1, %v457_v38 }
 0x183   : > { %997 = vmatmul.mubr.msk.bf16.gmra.mrb[4].mxu1 %vm475_vm1, %v458_v37 }
 0x24e   : > { %v994_v39 = vpop.f32.mrb[0].mxu1 }
 0x24f   : > { %v522_v40 = vpop.f32.mrb[1].mxu1 }
 0x250   : > { %v995_v41 = vpop.f32.mrb[2].mxu1 }
 0x251   : > { %v555_v42 = vpack.c.bf16 %v995_v41, %v994_v39  ;;  %v525_v43 = vpop.f32.mrb[3].mxu1 }
 0x252   : > { %v554_v44 = vpack.c.bf16 %v525_v43, %v522_v40 }
 0x253   : > { %563 = vst [vmem:[#allocation2 + $0x8] sm:$0xff] %v555_v42 }
 0x254   : > { %562 = vst [vmem:[#allocation2] sm:$0xff] %v554_v44 }
 0x256   : > { %v998_v45 = vpop.f32.mrb[4].mxu1 }
 0x257   : > { %v538_v46 = vpop.f32.mrb[5].mxu1 }
 0x258   : > { %v999_v47 = vpop.f32.mrb[6].mxu1 }
 0x259   : > { %v557_v48 = vpack.c.bf16 %v999_v47, %v998_v45  ;;  %v541_v49 = vpop.f32.mrb[7].mxu1 }
 0x25a   : > { %v556_v50 = vpack.c.bf16 %v541_v49, %v538_v46 }
 0x25b   : > { %565 = vst [vmem:[#allocation2 + $0x18] sm:$0xff] %v557_v48 }
 0x25c   : > { %564 = vst [vmem:[#allocation2 + $0x10] sm:$0xff] %v556_v50 }
 0x25d PF: > { %p936_p7 = scmp.ne.s32.totalorder %s1357_s18, 1 }
 0x25e   : > { %v578_v51 = vld [vmem:[#allocation2] sm:$0xff] (!%p936_p7)  ;;  %v579_v52 = vld [vmem:[#allocation2 + $0x8] sm:$0xff] (!%p936_p7)  ;;  %vm609_vm2 = vcmask (!%p936_p7), 523264   ;;  %v1127_v55 = vld [vmem:[#allocation6 + $0x10] sm:$0xff] (!%p936_p7)  }
 0x25f   : > { %569 = sbr.rel (%p936_p7) target bundleno = 1169 (0x491), region = 68  ;;  %1000 = vmatprep.subr.bf16.mxu0 (!%p936_p7), %v578_v51  ;;  %1016 = vmatprep.subr.bf16.mxu1 (!%p936_p7), %v578_v51  ;;  %v1125_v53 = vld [vmem:[#allocation6] sm:$0xff] (!%p936_p7)   ;;  %v1126_v57 = vld [vmem:[#allocation6 + $0x8] sm:$0xff] (!%p936_p7)   ;;  %v1128_v58 = vld [vmem:[#allocation6 + $0x18] sm:$0xff] (!%p936_p7)  }
 0x260   : > { %1001 = vmatpush3.bf16.msra.mxu0 (!%p936_p7), %v578_v51  ;;  %1020 = vmatpush3.bf16.msra.mxu1 (!%p936_p7), %v578_v51  ;;  %v937_v59 = vld [vmem:[#allocation11] ss:$0 sm:$0xff] (!%p936_p7) }
 0x261   : > { %1002 = vmatprep.subr.bf16.mxu0 (!%p936_p7), %v579_v52  ;;  %1017 = vmatprep.subr.bf16.mxu1 (!%p936_p7), %v579_v52 }
 0x262   : > { %1008 = vmatprep.mubr.msk.bf16.mxu0 (!%p936_p7), %vm609_vm2, %v1125_v53  ;;  %v581_v56 = vld [vmem:[#allocation2 + $0x18] sm:$0xff] (!%p936_p7)  ;;  %1012 = vmatprep.mubr.msk.bf16.mxu1 (!%p936_p7), %vm609_vm2, %v1127_v55 }
 0x263   : > { %v580_v54 = vld [vmem:[#allocation2 + $0x10] sm:$0xff] (!%p936_p7) }
 0x264   : > { %1003 = vmatpush3.bf16.msra.mxu0 (!%p936_p7), %v579_v52  ;;  %1021 = vmatpush3.bf16.msra.mxu1 (!%p936_p7), %v579_v52 }
 0x265   : > { %1004 = vmatprep.subr.bf16.mxu0 (!%p936_p7), %v580_v54  ;;  %1018 = vmatprep.subr.bf16.mxu1 (!%p936_p7), %v580_v54 }
 0x268   : > { %1005 = vmatpush3.bf16.msra.mxu0 %v580_v54  ;;  %1022 = vmatpush3.bf16.msra.mxu1 %v580_v54 }
 0x269   : > { %1006 = vmatprep.subr.bf16.mxu0 %v581_v56  ;;  %1019 = vmatprep.subr.bf16.mxu1 %v581_v56 }
 0x26c   : > { %1007 = vmatpush3.bf16.msra.mxu0 %v581_v56  ;;  %1023 = vmatpush3.bf16.msra.mxu1 %v581_v56 }
 0x26f   : > { %1009 = vmatmul.mubr.msk.bf16.vlgmr.msra.gmra.mrb[0].mxu0 %vm609_vm2, %v1126_v57  ;;  %1013 = vmatmul.mubr.msk.bf16.vlgmr.msra.gmra.mrb[0].mxu1 %vm609_vm2, %v1128_v58 }
 0x342   : > { %v1010_v60 = vpop.f32.mrb[0].mxu0  ;;  %v1014_v61 = vpop.f32.mrb[0].mxu1 }
 0x343   : > { %v665_v62 = vadd.f32 %v1010_v60, %v937_v59  ;;  %v656_v63 = vpop.f32.mrb[1].mxu0  ;;  %v672_v0 = vpop.f32.mrb[1].mxu1  ;;  %v681_v11 = vadd.f32 %v1014_v61, %v937_v59 }
 0x344   : > { %v657_v1 = vadd.f32 %v937_v59, %v656_v63  ;;  %v1011_v2 = vpop.f32.mrb[2].mxu0  ;;  %v1015_v3 = vpop.f32.mrb[2].mxu1  ;;  %v673_v6 = vadd.f32 %v937_v59, %v672_v0 }
 0x345   : > { %691 = vmax.xlane.f32.xlu1 %v665_v62  ;;  %v659_v4 = vpop.f32.mrb[3].mxu0  ;;  %v675_v5 = vpop.f32.mrb[3].mxu1  ;;  %v668_v7 = vadd.f32 %v1011_v2, %v937_v59  ;;  %v684_v10 = vadd.f32 %v1015_v3, %v937_v59 }
 0x346   : > { %687 = vmax.xlane.f32.xlu0 %v657_v1  ;;  %v676_v8 = vadd.f32 %v937_v59, %v675_v5  ;;  %v660_v9 = vadd.f32 %v937_v59, %v659_v4 }
 0x349   : > { %693 = vmax.xlane.f32.xlu1 %v668_v7 }
 0x34a   : > { %695 = vmax.xlane.f32.xlu0 %v673_v6 }
 0x34d   : > { %697 = vmax.xlane.f32.xlu1 %v676_v8 }
 0x34e   : > { %689 = vmax.xlane.f32.xlu0 %v660_v9 }
 0x351   : > { %701 = vmax.xlane.f32.xlu1 %v684_v10 }
 0x352   : > { %699 = vmax.xlane.f32.xlu0 %v681_v11 }
 0x3d2   : > { %v692_v12 = vpop.xlane.xlu1 %691 }
 0x3d3   : > { %v1583_v13 = vsub.f32 %v665_v62, %v692_v12  ;;  %v688_v14 = vpop.xlane.xlu0 %687 }
 0x3d4   : > { %v1585_v15 = vsub.f32 %v657_v1, %v688_v14 }
 0x3d5   : > { %v715_v16 = vmul.f32 1.442695, %v1583_v13 }
 0x3d6   : > { %v711_v17 = vmul.f32 1.442695, %v1585_v15  ;;  %v694_v18 = vpop.xlane.xlu1 %693 }
 0x3d7   : > { %1129 = vpow2.f32 %v715_v16  ;;  %v1589_v19 = vsub.f32 %v668_v7, %v694_v18  ;;  %v696_v20 = vpop.xlane.xlu0 %695 }
 0x3d8   : > { %v1591_v21 = vsub.f32 %v673_v6, %v696_v20  ;;  %1131 = vpow2.f32 %v711_v17 }
 0x3d9   : > { %v717_v22 = vmul.f32 1.442695, %v1589_v19 }
 0x3da   : > { %v698_v23 = vpop.xlane.xlu1 %697  ;;  %v719_v24 = vmul.f32 1.442695, %v1591_v21 }
 0x3db   : > { %1133 = vpow2.f32 %v717_v22  ;;  %v1595_v25 = vsub.f32 %v676_v8, %v698_v23  ;;  %v690_v26 = vpop.xlane.xlu0 %689 }
 0x3dc   : > { %v1597_v27 = vsub.f32 %v660_v9, %v690_v26  ;;  %1135 = vpow2.f32 %v719_v24 }
 0x3dd   : > { %v721_v30 = vmul.f32 1.442695, %v1595_v25 }
 0x3de   : > { %v713_v28 = vmul.f32 1.442695, %v1597_v27  ;;  %v702_v29 = vpop.xlane.xlu1 %701 }
 0x3df   : > { %v700_v31 = vpop.xlane.xlu0 %699  ;;  %v1601_v32 = vsub.f32 %v684_v10, %v702_v29 }
 0x3e0   : > { %1137 = vpow2.f32 %v713_v28  ;;  %v1603_v33 = vsub.f32 %v681_v11, %v700_v31 }
 0x3e1   : > { %v1130_v34 = vpop.eup %1129  ;;  %1139 = vpow2.f32 %v721_v30  ;;  %v725_v37 = vmul.f32 1.442695, %v1601_v32 }
 0x3e2   : > { %v723_v35 = vmul.f32 1.442695, %v1603_v33  ;;  %731 = vadd.xlane.f32.xlu0 %v1130_v34  ;;  %v1132_v36 = vpop.eup %1131 }
 0x3e4   : > { %1141 = vpow2.f32 %v723_v35 }
 0x3e5   : > { %v1134_v38 = vpop.eup %1133  ;;  %1143 = vpow2.f32 %v725_v37 }
 0x3e6   : > { %733 = vadd.xlane.f32.xlu1 %v1134_v38  ;;  %727 = vadd.xlane.f32.xlu0 %v1132_v36  ;;  %v1136_v39 = vpop.eup %1135 }
 0x3ea   : > { %v1138_v40 = vpop.eup %1137  ;;  %735 = vadd.xlane.f32.xlu0 %v1136_v39 }
 0x3eb   : > { %729 = vadd.xlane.f32.xlu1 %v1138_v40  ;;  %v1140_v41 = vpop.eup %1139 }
 0x3ee   : > { %v1142_v42 = vpop.eup %1141 }
 0x3ef   : > { %737 = vadd.xlane.f32.xlu1 %v1140_v41  ;;  %739 = vadd.xlane.f32.xlu0 %v1142_v42  ;;  %v1144_v43 = vpop.eup %1143 }
 0x3f3   : > { %741 = vadd.xlane.f32.xlu1 %v1144_v43 }
 0x46f   : > { %v732_v44 = vpop.xlane.xlu0 %731 }
 0x470   : > { %1145 = vlog2.f32 %v732_v44 }
 0x473   : > { %v734_v45 = vpop.xlane.xlu1 %733  ;;  %v728_v46 = vpop.xlane.xlu0 %727 }
 0x474   : > { %1147 = vlog2.f32 %v734_v45 }
 0x475   : > { %1149 = vlog2.f32 %v728_v46 }
 0x477   : > { %v736_v47 = vpop.xlane.xlu0 %735 }
 0x478   : > { %1151 = vlog2.f32 %v736_v47  ;;  %v730_v48 = vpop.xlane.xlu1 %729 }
 0x479   : > { %1153 = vlog2.f32 %v730_v48 }
 0x47a   : > { %v1146_v49 = vpop.eup %1145 }
 0x47b   : > { %v748_v50 = vmul.f32 0.6931472, %v1146_v49 }
 0x47c   : > { %v738_v51 = vpop.xlane.xlu1 %737  ;;  %v740_v52 = vpop.xlane.xlu0 %739 }
 0x47d   : > { %v761_v53 = vsub.f32 %v1583_v13, %v748_v50  ;;  %1155 = vlog2.f32 %v738_v51 }
 0x47e   : > { %v1148_v54 = vpop.eup %1147  ;;  %1157 = vlog2.f32 %v740_v52 }
 0x47f   : > { %v1150_v55 = vpop.eup %1149  ;;  %769 = vst [vmem:[#allocation12 + $0x10] sm:$0xff] %v761_v53  ;;  %v750_v56 = vmul.f32 0.6931472, %v1148_v54 }
 0x480   : > { %v744_v57 = vmul.f32 0.6931472, %v1150_v55  ;;  %v742_v58 = vpop.xlane.xlu1 %741 }
 0x481   : > { %v762_v59 = vsub.f32 %v1589_v19, %v750_v56  ;;  %1159 = vlog2.f32 %v742_v58 }
 0x482   : > { %v1152_v60 = vpop.eup %1151  ;;  %v759_v61 = vsub.f32 %v1585_v15, %v744_v57 }
 0x483   : > { %v1154_v62 = vpop.eup %1153  ;;  %770 = vst [vmem:[#allocation12 + $0x18] sm:$0xff] %v762_v59  ;;  %v752_v63 = vmul.f32 0.6931472, %v1152_v60 }
 0x484   : > { %767 = vst [vmem:[#allocation12] sm:$0xff] %v759_v61  ;;  %v746_v0 = vmul.f32 0.6931472, %v1154_v62 }
 0x485   : > { %v763_v1 = vsub.f32 %v1591_v21, %v752_v63 }
 0x486   : > { %v760_v2 = vsub.f32 %v1597_v27, %v746_v0 }
 0x487   : > { %v1156_v3 = vpop.eup %1155  ;;  %771 = vst [vmem:[#allocation12 + $0x20] sm:$0xff] %v763_v1 }
 0x488   : > { %v1158_v4 = vpop.eup %1157  ;;  %768 = vst [vmem:[#allocation12 + $0x8] sm:$0xff] %v760_v2  ;;  %v754_v5 = vmul.f32 0.6931472, %v1156_v3 }
 0x489   : > { %v756_v6 = vmul.f32 0.6931472, %v1158_v4 }
 0x48a   : > { %v764_v7 = vsub.f32 %v1595_v25, %v754_v5 }
 0x48b   : > { %v1160_v8 = vpop.eup %1159  ;;  %v765_v9 = vsub.f32 %v1603_v33, %v756_v6 }
 0x48c   : > { %772 = vst [vmem:[#allocation12 + $0x28] sm:$0xff] %v764_v7  ;;  %v758_v10 = vmul.f32 0.6931472, %v1160_v8 }
 0x48d   : > { %773 = vst [vmem:[#allocation12 + $0x30] sm:$0xff] %v765_v9 }
 0x48e   : > { %v766_v11 = vsub.f32 %v1601_v32, %v758_v10 }
 0x490   : > { %774 = vst [vmem:[#allocation12 + $0x38] sm:$0xff] %v766_v11 }
 0x491 PF: > { %p1617_p8 = scmp.eq.s32.totalorder %s902_s21, 1  ;;  %s1374_s23 = smov [#allocation12]  }
 0x492   : > { %s790_s24 = sshll.u32 %s1374_s23, 4  ;;  %s791_s24 = int_to_ptr.vmem [resolvable:$true] %s790_s24 }
 0x493   : > { %s1301_s29 = scalar_lea.vmem %s791_s24, 1024  ;;  %s1307_s10 = scalar_lea.vmem %s791_s24, 2048 }
 0x494   : > { %p1302_p9 = scmp.ne.s32.totalorder %s791_s24, %s1301_s29  ;;  %p1308_p12 = scmp.lt.s32.totalorder %s791_s24, %s791_s24 }
 0x495   : > { %p1309_p13 = scmp.lt.s32.totalorder %s1307_s10, %s1301_s29 }
 0x496   : > { %p1303_p10 = pnand %p1302_p9, %p1617_p8 }
 0x497   : > { %p1310_p0 = por %p1309_p13, %p1308_p12 }
 0x498   : > { %p1304_p11 = pneg %p1303_p10 }
 0x49a   : > { %p1311_p1 = pnand %p1310_p0, %p1304_p11 }
 0x49c   : > { %1314 = shalt.err (!%p1311_p1)
}
 0x49d   : > { %s1315_s15 = scalar_lea.hbm %s1656_s5, 1024 }
 0x49e   : > { %p1316_p4 = scmp.ne.s32.totalorder %s1656_s5, %s1315_s15  ;;  %p1321_p6 = scmp.lt.u32.totalorder %s1315_s15, %s1656_s5 }
 0x4a0   : > { %p1317_p2 = pnand %p1316_p4, %p1617_p8 }
 0x4a2   : > { %p1318_p3 = pneg %p1317_p2 }
 0x4a4   : > { %p1323_p5 = pnand %p1321_p6, %p1318_p3 }
 0x4a6   : > { %1326 = shalt.err (!%p1323_p5)
}
 0x4a7   : > { %s1375_s30 = smov 128   ;;  %s1376_s6 = smov 8  }
 0x4a8   : > { %1045 = dma.vmem_to_hbm [thread:$0]  (%p1617_p8), %s791_s24, 1024, %s1656_s5, [#allocation5], %s1375_s30, %s1375_s30, %s1376_s6  }
 0x4a9 PF: > { %p1079_p7 = scmp.ge.s32.totalorder %s1365_s20, 2  ;;  %p1080_p9 = scmp.eq.s32.totalorder %s903_s22, 1 }
 0x4ab   : > { %p1065_p10 = pnand %p1080_p9, %p1079_p7 }
 0x4ad   : > { %1352 = dma.done.wait (!%p1065_p10), [#allocation5], 1024  }
 0x4ae   : > { %1354 = vsyncadd (!%p1065_p10), [#allocation5], 4294966272  ;;  %s21_s20 = sadd.s32 1, %s1365_s20   ;;  %s1667_s18 = smov %s1361_s19 }
 0x4af   : > { %p18_p11 = scmp.ge.s32.totalorder %s21_s20, 4   ;;  %s1668_s19 = smov %s1670_s13 }
 0x4b1   :  { %20 = sbr.rel (!%p18_p11) target bundleno = 6 (0x6), region = 103 }
 0x4b8   :  { %811 = vsyncpa [#allocation4], 1 }
 0x4b9   :  { %813 = vsyncpa [#allocation4 + $0x1], 1 }
 0x4ba   :  { %814 = vsyncpa [#allocation7], 1 }
 0x4bb   :  { %815 = vsyncpa [#allocation10], 1 }
 0x4bc   :  { %816 = vsyncpa [#allocation5], 1 }
 0x4bd   :  { %818 = vsyncpa [#allocation5 + $0x1], 1 }

</bundles_post_ra>
